<compile_context>
chip_gen: v5e
topology: v5e:2x2
jax: 0.10.0
libtpu: 0.0.40
codegen_flags: <defaults>
</compile_context>

<pallas_src>
import jax
import jax.numpy as jnp
from jax.experimental import pallas as pl
from jax.experimental.pallas import tpu as pltpu


def _round_up(x, m):
    return ((x + m - 1) // m) * m


def policy_net_kernel(x_ref, w1_ref, b1_ref, w2_ref, b2_ref, o_ref):
    # x_ref: (TB, F) f32, w1_ref: (F, HP) bf16, b1_ref: (1, HP) f32,
    # w2_ref: (HP, OP) bf16, b2_ref: (1, OP) f32 (-1e30 in padded cols), o_ref: (TB, OP) f32.
    x = x_ref[...].astype(jnp.bfloat16)                                     # cast in VMEM, no HBM copy
    h = jnp.dot(x, w1_ref[...], preferred_element_type=jnp.float32)        # MXU, f32 acc
    h = jnp.maximum(h + b1_ref[...], 0.0)                                   # bias + ReLU (f32, VPU)
    logits = jnp.dot(h.astype(jnp.bfloat16), w2_ref[...],
                     preferred_element_type=jnp.float32)                    # MXU, f32 acc
    logits = logits + b2_ref[...]                                           # padded cols -> -1e30
    # Numerically stable softmax over the (slightly padded) last dim; padded lanes exp() to 0.
    m = jnp.max(logits, axis=-1, keepdims=True)
    e = jnp.exp(logits - m)                                                 # EUP
    denom = jnp.sum(e, axis=-1, keepdims=True)                              # XLU
    inv = pl.reciprocal(denom, approx=True)                                 # EUP vrcp, off the VALU path
    o_ref[...] = (e * inv).astype(o_ref.dtype)


def prepare_policy_params(w1, b1, w2, b2):
    """Pad/cast parameters ONCE (hoisted out of the per-call path).

    w1: (F, H); b1: (H,) or (1, H); w2: (H, O); b2: (O,) or (1, O).
    Padded w-columns/rows are zero (contribute nothing); padded b2 columns are -1e30 so the
    in-kernel softmax gives them exactly 0.
    """
    F, H = w1.shape
    O = w2.shape[1]
    HP = _round_up(H, 128)   # lane-pad hidden dim (MXU / lane width)
    OP = _round_up(O, 8)     # small pad for the output dim; stays the full-array last dim
    w1p = jnp.zeros((F, HP), jnp.bfloat16).at[:, :H].set(w1.astype(jnp.bfloat16))
    b1p = jnp.zeros((1, HP), jnp.float32).at[:, :H].set(b1.reshape(1, H).astype(jnp.float32))
    w2p = jnp.zeros((HP, OP), jnp.bfloat16).at[:H, :O].set(w2.astype(jnp.bfloat16))
    b2p = jnp.full((1, OP), -1e30, jnp.float32).at[:, :O].set(b2.reshape(1, O).astype(jnp.float32))
    return {"w1p": w1p, "b1p": b1p, "w2p": w2p, "b2p": b2p, "out_features": O}


def policy_network_forward(x, params, *, block_b=2048):
    """x: (B, F) f32; params from prepare_policy_params.

    Returns softmax(relu(x @ w1 + b1) @ w2 + b2) of shape (B, O), f32.
    """
    B, F = x.shape
    w1p, b1p, w2p, b2p = params["w1p"], params["b1p"], params["w2p"], params["b2p"]
    O = params["out_features"]
    HP = w1p.shape[1]
    OP = w2p.shape[1]

    # Batch tile: multiple of 8 sublanes, large to amortize per-grid-step overhead, but kept to
    # >=2 grid steps at moderate/large B so both v7x TensorCores get work.
    TB = min(block_b, _round_up(B, 8))
    if B > 8 and TB >= B:
        TB = _round_up(-(-B // 2), 8)
    grid_b = pl.cdiv(B, TB)

    cost = pl.CostEstimate(
        flops=2 * B * (F * HP + HP * OP),
        transcendentals=B * OP,
        bytes_accessed=(B * F * 4           # x (f32 read)
                        + F * HP * 2 + HP * 4   # w1 (bf16) + b1 (f32)
                        + HP * OP * 2 + OP * 4  # w2 (bf16) + b2 (f32)
                        + B * OP * 4),          # output (f32 write)
    )

    out_padded = pl.pallas_call(
        policy_net_kernel,
        out_shape=jax.ShapeDtypeStruct((B, OP), jnp.float32),
        grid=(grid_b,),
        in_specs=[
            pl.BlockSpec((TB, F), lambda i: (i, 0)),     # batch-tiled activations (f32, cast in-kernel)
            pl.BlockSpec((F, HP), lambda i: (0, 0)),     # weights/biases stay VMEM-resident
            pl.BlockSpec((1, HP), lambda i: (0, 0)),
            pl.BlockSpec((HP, OP), lambda i: (0, 0)),
            pl.BlockSpec((1, OP), lambda i: (0, 0)),
        ],
        out_specs=pl.BlockSpec((TB, OP), lambda i: (i, 0)),
        compiler_params=pltpu.CompilerParams(
            dimension_semantics=("parallel",),           # shard batch tiles across v7x's 2 TCs
            vmem_limit_bytes=32 << 20,
        ),
        cost_estimate=cost,
    )(x.astype(jnp.float32), w1p, b1p, w2p, b2p)

    return out_padded[:, :O]


def policy_network_ref(x, w1, b1, w2, b2):
    h = jnp.maximum(x @ w1 + b1.reshape(1, -1), 0.0)
    logits = h @ w2 + b2.reshape(1, -1)
    return jax.nn.softmax(logits, axis=-1)


def init_linear_params(key, fan_in, fan_out):
    # Deterministic init mimicking nn.Linear default: U(-1/sqrt(fan_in), 1/sqrt(fan_in)).
    kw, kb = jax.random.split(key)
    bound = 1.0 / jnp.sqrt(jnp.float32(fan_in))
    w = jax.random.uniform(kw, (fan_in, fan_out), jnp.float32, -bound, bound)
    b = jax.random.uniform(kb, (1, fan_out), jnp.float32, -bound, bound)
    return w, b


if __name__ == "__main__":
    # Small shapes consistent with the module: input_size=16, hidden_size=10, output_size=2.
    batch, input_size, hidden_size, output_size = 8, 16, 10, 2

    key = jax.random.PRNGKey(0)
    kx, k1, k2 = jax.random.split(key, 3)

    x = jax.random.normal(kx, (batch, input_size), jnp.float32)
    w1, b1 = init_linear_params(k1, input_size, hidden_size)
    w2, b2 = init_linear_params(k2, hidden_size, output_size)

    params = prepare_policy_params(w1, b1, w2, b2)   # pad/cast once, not per call
    out = policy_network_forward(x, params)
    out = jax.block_until_ready(out)

    # Sanity: shape, softmax rows sum to ~1 (approx reciprocal -> looser tol), and close to a
    # pure-JAX f32 reference (loose tolerance because the MXU operands are bf16).
    ref = policy_network_ref(x, w1, b1, w2, b2)
    row_sums = jnp.sum(out, axis=-1)
    assert out.shape == (batch, output_size)
    assert bool(jnp.all(jnp.abs(row_sums - 1.0) < 5e-3))
    assert bool(jnp.max(jnp.abs(out - ref)) < 3e-2)

    print("KERNEL_OK")
</pallas_src>

<mosaic_0001>
module attributes {stable_mosaic.version = 11 : i64} {
  func.func @policy_net_kernel(%arg0: i32, %arg1: memref<8x16xf32, #tpu.memory_space<vmem>>, %arg2: memref<16x128xbf16, #tpu.memory_space<vmem>>, %arg3: memref<1x128xf32, #tpu.memory_space<vmem>>, %arg4: memref<128x8xbf16, #tpu.memory_space<vmem>>, %arg5: memref<1x8xf32, #tpu.memory_space<vmem>>, %arg6: memref<8x8xf32, #tpu.memory_space<vmem>>) attributes {dimension_semantics = [#tpu.dimension_semantics<parallel>], iteration_bounds = array<i64: 1>, scalar_prefetch = 0 : i64, scratch_operands = 0 : i64, tpu.core_type = #tpu.core_type<tc>, window_params = [{transform_indices = @transform_0, window_bounds = array<i64: 8, 16>}, {pipeline_mode = #tpu.pipeline_mode<synchronous>, transform_indices = @transform_1, window_bounds = array<i64: 16, 128>}, {pipeline_mode = #tpu.pipeline_mode<synchronous>, transform_indices = @transform_2, window_bounds = array<i64: 1, 128>}, {pipeline_mode = #tpu.pipeline_mode<synchronous>, transform_indices = @transform_3, window_bounds = array<i64: 128, 8>}, {pipeline_mode = #tpu.pipeline_mode<synchronous>, transform_indices = @transform_4, window_bounds = array<i64: 1, 8>}, {transform_indices = @transform_5, window_bounds = array<i64: 8, 8>}]} {
    %c0 = arith.constant 0 : index
    %c0_0 = arith.constant 0 : index
    %0 = vector.load %arg1[%c0, %c0_0] : memref<8x16xf32, #tpu.memory_space<vmem>>, vector<8x16xf32>
    %1 = arith.truncf %0 : vector<8x16xf32> to vector<8x16xbf16>
    %c0_1 = arith.constant 0 : index
    %c0_2 = arith.constant 0 : index
    %2 = vector.load %arg2[%c0_1, %c0_2] : memref<16x128xbf16, #tpu.memory_space<vmem>>, vector<16x128xbf16>
    %cst = arith.constant dense<0.000000e+00> : vector<8x128xf32>
    %3 = tpu.matmul %1, %2, %cst {dimension_numbers = #tpu.dot_dimension_numbers<[1], [0], [0], [1], [0, 0, 1, 1], [], []>} : vector<8x16xbf16>, vector<16x128xbf16>, vector<8x128xf32> -> vector<8x128xf32>
    %c0_3 = arith.constant 0 : index
    %c0_4 = arith.constant 0 : index
    %4 = vector.load %arg3[%c0_3, %c0_4] : memref<1x128xf32, #tpu.memory_space<vmem>>, vector<1x128xf32>
    %5 = vector.broadcast %4 : vector<1x128xf32> to vector<8x128xf32>
    %6 = arith.addf %3, %5 : vector<8x128xf32>
    %cst_5 = arith.constant 0.000000e+00 : f32
    %7 = vector.broadcast %cst_5 : f32 to vector<8x128xf32>
    %8 = arith.maximumf %6, %7 : vector<8x128xf32>
    %9 = arith.truncf %8 : vector<8x128xf32> to vector<8x128xbf16>
    %c0_6 = arith.constant 0 : index
    %c0_7 = arith.constant 0 : index
    %10 = vector.load %arg4[%c0_6, %c0_7] : memref<128x8xbf16, #tpu.memory_space<vmem>>, vector<128x8xbf16>
    %cst_8 = arith.constant dense<0.000000e+00> : vector<8x8xf32>
    %11 = tpu.matmul %9, %10, %cst_8 {dimension_numbers = #tpu.dot_dimension_numbers<[1], [0], [0], [1], [0, 0, 1, 1], [], []>} : vector<8x128xbf16>, vector<128x8xbf16>, vector<8x8xf32> -> vector<8x8xf32>
    %c0_9 = arith.constant 0 : index
    %c0_10 = arith.constant 0 : index
    %12 = vector.load %arg5[%c0_9, %c0_10] : memref<1x8xf32, #tpu.memory_space<vmem>>, vector<1x8xf32>
    %13 = vector.broadcast %12 : vector<1x8xf32> to vector<8x8xf32>
    %14 = arith.addf %11, %13 : vector<8x8xf32>
    %cst_11 = arith.constant dense<0xFF800000> : vector<8xf32>
    %15 = vector.multi_reduction <maximumf>, %14, %cst_11 [1] : vector<8x8xf32> to vector<8xf32>
    %16 = vector.shape_cast %15 : vector<8xf32> to vector<8x1xf32>
    %17 = vector.broadcast %16 : vector<8x1xf32> to vector<8x8xf32>
    %18 = arith.subf %14, %17 : vector<8x8xf32>
    %19 = math.exp %18 : vector<8x8xf32>
    %cst_12 = arith.constant dense<0.000000e+00> : vector<8xf32>
    %20 = vector.multi_reduction <add>, %19, %cst_12 [1] : vector<8x8xf32> to vector<8xf32>
    %21 = vector.shape_cast %20 : vector<8xf32> to vector<8x1xf32>
    %22 = tpu.reciprocal %21 {approx = true} : vector<8x1xf32> -> vector<8x1xf32>
    %23 = vector.broadcast %22 : vector<8x1xf32> to vector<8x8xf32>
    %24 = arith.mulf %19, %23 : vector<8x8xf32>
    %c0_13 = arith.constant 0 : index
    %c0_14 = arith.constant 0 : index
    %25 = vector.load %arg6[%c0_13, %c0_14] : memref<8x8xf32, #tpu.memory_space<vmem>>, vector<8x8xf32>
    tpu.vector_store %arg6[%c0_13, %c0_14], %24 {strides = array<i32>} : memref<8x8xf32, #tpu.memory_space<vmem>>, vector<8x8xf32>,
    return
  }
  func.func @transform_0(%arg0: i32) -> (i32, i32) {
    %c0_i32 = arith.constant 0 : i32
    %c0_i32_0 = arith.constant 0 : i32
    return %arg0, %c0_i32 : i32, i32
  }
  func.func @transform_1(%arg0: i32) -> (i32, i32) {
    %c0_i32 = arith.constant 0 : i32
    %c0_i32_0 = arith.constant 0 : i32
    %c0_i32_1 = arith.constant 0 : i32
    return %c0_i32, %c0_i32_0 : i32, i32
  }
  func.func @transform_2(%arg0: i32) -> (i32, i32) {
    %c0_i32 = arith.constant 0 : i32
    %c0_i32_0 = arith.constant 0 : i32
    %c0_i32_1 = arith.constant 0 : i32
    return %c0_i32, %c0_i32_0 : i32, i32
  }
  func.func @transform_3(%arg0: i32) -> (i32, i32) {
    %c0_i32 = arith.constant 0 : i32
    %c0_i32_0 = arith.constant 0 : i32
    %c0_i32_1 = arith.constant 0 : i32
    return %c0_i32, %c0_i32_0 : i32, i32
  }
  func.func @transform_4(%arg0: i32) -> (i32, i32) {
    %c0_i32 = arith.constant 0 : i32
    %c0_i32_0 = arith.constant 0 : i32
    %c0_i32_1 = arith.constant 0 : i32
    return %c0_i32, %c0_i32_0 : i32, i32
  }
  func.func @transform_5(%arg0: i32) -> (i32, i32) {
    %c0_i32 = arith.constant 0 : i32
    %c0_i32_0 = arith.constant 0 : i32
    return %arg0, %c0_i32 : i32, i32
  }
}

</mosaic_0001>

<bundles_post_ra>
// kernel: tpu_custom_call.1
= control target key start
LH: loop header
LB: loop body
LE: loop exit
PB: predicated region body
PF: predicated region fallthrough
CT: control target
= control target key end

     0   :  { %vm36_vm0 = vcmask 130048   ;;  %s317_s0 = inlined_call_operand.vmem [shape: f32[8,16], index: 0, kind: input, shape index: {}]   ;;  %s318_s1 = inlined_call_operand.vmem [shape: bf16[16,128], index: 1, kind: input, shape index: {}]   ;;  %s319_s2 = inlined_call_operand.vmem [shape: f32[1,128], index: 2, kind: input, shape index: {}]   ;;  %s320_s3 = inlined_call_operand.vmem [shape: bf16[128,8], index: 3, kind: input, shape index: {}]   ;;  %s321_s4 = inlined_call_operand.vmem [shape: f32[1,8], index: 4, kind: input, shape index: {}]   ;;  %s322_s5 = inlined_call_operand.hbm [shape: f32[8,8], index: 5, kind: output, shape index: {}]  }
   0x1   :  { %v202_v0 = vld [vmem:[%s318_s1] sm:$0xff]  ;;  %v210_v2 = vld [vmem:[%s320_s3 + $0x38] sm:$0xff]  ;;  %v209_v4 = vld [vmem:[%s320_s3 + $0x30] sm:$0xff] }
   0x2   :  { %v22_v1 = vld [vmem:[%s317_s0] sm:$0xff]  ;;  %47 = vmatpush.bf16.msra.mxu0 %v202_v0  ;;  %123 = vmatpush.bf16.msra.mxu1 %v210_v2 }
   0x3   :  { %v23_v3 = vpack.c.bf16 %v22_v1, %v22_v1 }
   0x4   :  { %10 = vsyncpa [#allocation3], 0  ;;  %v208_v5 = vld [vmem:[%s320_s3 + $0x28] sm:$0xff]  ;;  %v207_v6 = vld [vmem:[%s320_s3 + $0x20] sm:$0xff]  ;;  %vm136_vm1 = vcmask 64512   ;;  %s156_s16 = sshll.u32 %s322_s5, 4  ;;  %s157_s16 = int_to_ptr.hbm [resolvable:$true] %s156_s16 }
   0x5   :  { %169 = vmatmul.msk.bf16.vlgmr.msra.gmra.mxu0 %vm36_vm0, %v23_v3  ;;  %v206_v7 = vld [vmem:[%s320_s3 + $0x18] sm:$0xff]  ;;  %v205_v8 = vld [vmem:[%s320_s3 + $0x10] sm:$0xff]  ;;  %v204_v9 = vld [vmem:[%s320_s3 + $0x8] sm:$0xff] }
   0x6   :  { %124 = vmatpush.bf16.msra.mxu1 %v209_v4  ;;  %v203_v10 = vld [vmem:[%s320_s3] sm:$0xff] }
   0x7   :  { %v212_v11 = vld [vmem:[%s319_s2] ss:$0 sm:$0xff]  ;;  %s244_s2 = smov [#allocation2]  }
   0x8   :  { %v213_v17 = vld [vmem:[%s321_s4] ss:$0 sm:$0xff]  ;;  %s154_s3 = sshll.u32 %s244_s2, 4  ;;  %s155_s3 = int_to_ptr.vmem [resolvable:$true] %s154_s3 }
   0xa   :  { %125 = vmatpush.bf16.msra.mxu1 %v208_v5 }
   0xe   :  { %126 = vmatpush.bf16.msra.mxu1 %v207_v6 }
  0x12   :  { %127 = vmatpush.bf16.msra.mxu1 %v206_v7 }
  0x16   :  { %128 = vmatpush.bf16.msra.mxu1 %v205_v8 }
  0x1a   :  { %129 = vmatpush.bf16.msra.mxu1 %v204_v9 }
  0x1e   :  { %130 = vmatpush.bf16.msra.mxu1 %v203_v10 }
  0x82   :  { %v49_v12 = vpop.f32.mrf.mxu0 }
  0x83   :  { %v50_v13 = vadd.f32 %v212_v11, %v49_v12 }
  0x85   :  { %v53_v14 = vmax.f32 %v50_v13, 0.0 }
  0x87   :  { %v54_v15 = vpack.c.bf16 %v53_v14, %v53_v14 }
  0x89   :  { %131 = vmatmul.bf16.vlgmr.msra.gmra.mxu1 %v54_v15 }
  0x8a   :  { %v51_v16 = vpop.f32.mrf.mxu0 }
 0x106   :  { %v132_v18 = vpop.f32.mrf.mxu1 }
 0x107   :  { %v133_v19 = vadd.f32 %v213_v17, %v132_v18 }
 0x109   :  { %v137_v20 = vsel %vm136_vm1, %v133_v19, -inf }
 0x10a   :  { %138 = vmax.xlane.f32.xlu0 %v137_v20 }
 0x10e   :  { %v134_v21 = vpop.f32.mrf.mxu1 }
 0x17d   :  { %v139_v22 = vpop.xlane.xlu0 %138 }
 0x17e   :  { %v140_v23 = vsub.f32 %v133_v19, %v139_v22 }
 0x180   :  { %v141_v24 = vmul.f32 1.442695, %v140_v23 }
 0x182   :  { %214 = vpow2.f32 %v141_v24 }
 0x188   :  { %v215_v25 = vpop.eup %214 }
 0x189   :  { %v143_v26 = vsel %vm136_vm1, %v215_v25, 0.0 }
 0x18a   :  { %144 = vadd.xlane.f32.xlu0 %v143_v26 }
 0x1fd   :  { %v145_v27 = vpop.xlane.xlu0 %144 }
 0x1fe   :  { %216 = vrcp.f32 %v145_v27 }
 0x204   :  { %v217_v28 = vpop.eup %216 }
 0x205   :  { %v147_v29 = vmul.f32 %v217_v28, %v215_v25 }
 0x207   :  { %148 = vst.msk [vmem:[#allocation2] sm:$0xff] %vm136_vm1, %v147_v29 }
 0x208   :  { %159 = dma.vmem_to_hbm [thread:$0]  %s155_s3, 128, %s157_s16, [#allocation3]  }
 0x209   :  { %242 = dma.done.wait [#allocation3], 128  }
 0x20a   :  { %243 = vsyncadd [#allocation3], 4294967168 }
 0x20b   :  { %164 = vsyncpa [#allocation3], 1 }

</bundles_post_ra>
